<compile_context>
chip_gen: v7x
topology: tpu7x:2x2x1
jax: 0.10.0
libtpu: 0.0.40
codegen_flags: <defaults>
</compile_context>

<pallas_src>
import math

import jax
import jax.numpy as jnp
from jax.experimental import pallas as pl
from jax.experimental.pallas import tpu as pltpu


_VMEM_LIMIT = 32 * 1024 * 1024  # raise v5e's 16 MiB scoped default; safe on v6e/v7x


# ----------------------------------------------------------------------------
# Pallas kernels (the hot paths)
# ----------------------------------------------------------------------------

def _conv_matmul_kernel(w_ref, p_ref, b_ref, o_ref):
    # Lane-dense conv matmul: (C_out, K) @ (K, TN) + bias, spatial on lanes.
    # w: (C_out, K), p: (1, K, TN), b: (C_out, 1), o: (1, C_out, TN)
    acc = jnp.dot(w_ref[...], p_ref[0], preferred_element_type=jnp.float32)
    o_ref[0] = acc + b_ref[...]


def _hyperbolic_kernel(scal_ref, cart_ref, fib_ref, tf_ref, bf_ref,
                       oc_ref, of_ref):
    # group_mul by the stacked bias (right multiplication), then fiber_rotation,
    # operating directly on the NCHW-contiguous conv output (TB, C_out, n).
    beta0 = scal_ref[0]          # betas[0]            (0 when bias=False)
    theta0 = scal_ref[1]         # thetas[0]
    inv_1p_t0 = scal_ref[2]      # 1 / (1 + thetas[0]) (precomputed in wrapper)

    c = cart_ref[...]            # (TB, 1)        cartan coordinate
    f = fib_ref[...]             # (TB, C_out, n) fiber
    tf = tf_ref[...]             # (C_out, 1)     thetas[1:] * sqrt(n), bcast over n
    bf = bf_ref[...]             # (C_out, 1)     betas[1:]  * sqrt(n), bcast over n

    # group_mul: (c, f) <- (c + beta0, f + exp(c) * beta_f)
    v0 = c + beta0                                       # (TB, 1)
    fg = f + jnp.exp(c)[:, :, None] * bf[None, :, :]     # (TB, C_out, n)

    # fiber_rotation: rotation in span{e0, theta} taking e0 -> theta
    #   R v = v - ((v0 + <theta,v>) / (1 + theta0)) * (e0 + theta) + 2*v0*theta
    dot_ch = jnp.sum(fg * tf[None, :, :], axis=2)               # (TB, C_out)
    s = theta0 * v0 + jnp.sum(dot_ch, axis=1, keepdims=True)    # (TB, 1)
    coef = (v0 + s) * inv_1p_t0                                 # (TB, 1)

    oc_ref[...] = v0 - coef * (theta0 + 1.0) + 2.0 * v0 * theta0
    of_ref[...] = fg + (2.0 * v0 - coef)[:, :, None] * tf[None, :, :]


# ----------------------------------------------------------------------------
# Glue (plain JAX): parameter shaping, patch extraction, tiling heuristics
# ----------------------------------------------------------------------------

def _pair(v):
    return (v, v) if isinstance(v, int) else tuple(v)


def _im2col_cmajor(x, kh, kw, stride, padding, dilation):
    """x: (B, C, H, W) -> patches (B, C*kh*kw, Ho*Wo), K ordered (C, kh, kw).

    Single materialization in the final layout: the trailing reshape only merges
    adjacent axes, so no extra transpose pass is emitted.
    """
    # TODO(synk): the remaining kh*kw patch blow-up could be removed entirely by
    #             DMA-ing padded image slabs and assembling the RHS in VMEM.
    B, C, H, W = x.shape
    sh, sw = stride
    ph, pw = padding
    dh, dw = dilation
    Ho = (H + 2 * ph - dh * (kh - 1) - 1) // sh + 1
    Wo = (W + 2 * pw - dw * (kw - 1) - 1) // sw + 1
    xp = jnp.pad(x, ((0, 0), (0, 0), (ph, ph), (pw, pw)))
    cols = []
    for i in range(kh):
        for j in range(kw):
            sl = xp[:, :, i * dh:i * dh + (Ho - 1) * sh + 1:sh,
                          j * dw:j * dw + (Wo - 1) * sw + 1:sw]   # (B, C, Ho, Wo)
            cols.append(sl)
    p = jnp.stack(cols, axis=2)                     # (B, C, kh*kw, Ho, Wo)
    return p.reshape(B, C * kh * kw, Ho * Wo), Ho, Wo


def _pick_spatial_tile(n, K):
    # Full-n blocks for small outputs; otherwise a 128-aligned tile sized so the
    # double-buffered (K, TN) patch block stays a few MiB.
    if n <= 1024:
        return n
    budget_elems = (4 * 1024 * 1024) // (4 * max(K, 1))
    return int(max(128, min(1024, (budget_elems // 128) * 128)))


def conv2d_pallas(x_nchw, weight, bias, stride, padding, dilation):
    """NCHW conv via channel-major im2col + per-image lane-dense matmul.

    Returns fiber of shape (B, C_out, Ho*Wo) (NCHW-contiguous), plus Ho, Wo.
    """
    C_out, C_in, kh, kw = weight.shape
    B = x_nchw.shape[0]
    patches, Ho, Wo = _im2col_cmajor(x_nchw, kh, kw, stride, padding, dilation)
    n = Ho * Wo
    K = C_in * kh * kw

    wmat = weight.reshape(C_out, K)                  # torch layout, no transpose
    if bias is None:
        bias = jnp.zeros((C_out,), jnp.float32)
    bcol = bias.reshape(C_out, 1)

    TN = _pick_spatial_tile(n, K)
    grid = (B, pl.cdiv(n, TN))

    out = pl.pallas_call(
        _conv_matmul_kernel,
        out_shape=jax.ShapeDtypeStruct((B, C_out, n), jnp.float32),
        grid=grid,
        in_specs=[
            pl.BlockSpec((C_out, K), lambda b, t: (0, 0)),       # weight (resident)
            pl.BlockSpec((1, K, TN), lambda b, t: (b, 0, t)),    # patch tile
            pl.BlockSpec((C_out, 1), lambda b, t: (0, 0)),       # conv bias
        ],
        out_specs=pl.BlockSpec((1, C_out, TN), lambda b, t: (b, 0, t)),
        compiler_params=pltpu.CompilerParams(
            dimension_semantics=("parallel", "parallel"),
            vmem_limit_bytes=_VMEM_LIMIT,
        ),
    )(wmat, patches, bcol)
    return out, Ho, Wo


def _pick_batch_tile(B, C_out, n):
    row_bytes = 4 * C_out * n
    cap = max(1, (16 * 1024 * 1024) // (4 * row_bytes))   # in+out, double-buffered
    if B <= cap:
        return B                                           # full dim: always legal
    return max(8, (min(cap, B) // 8) * 8)                  # 8-divisible tile


def hyperbolic_step_pallas(cartan, fiber, theta0, thetas_f, beta0, betas_f):
    """cartan (B,1), fiber (B,C_out,n) -> (cartan_out (B,1), fiber_out (B,C_out,n))."""
    B, C_out, n = fiber.shape
    TB = _pick_batch_tile(B, C_out, n)

    # Tiny per-layer scalars in SMEM: [beta0, theta0, 1/(1+theta0)].
    scal = jnp.stack([beta0, theta0, 1.0 / (1.0 + theta0)]).astype(jnp.float32)

    out_c, out_f = pl.pallas_call(
        _hyperbolic_kernel,
        out_shape=(jax.ShapeDtypeStruct((B, 1), jnp.float32),
                   jax.ShapeDtypeStruct((B, C_out, n), jnp.float32)),
        grid=(pl.cdiv(B, TB),),
        in_specs=[
            pl.BlockSpec(memory_space=pltpu.MemorySpace.SMEM),     # scalars
            pl.BlockSpec((TB, 1), lambda i: (i, 0)),               # cartan
            pl.BlockSpec((TB, C_out, n), lambda i: (i, 0, 0)),     # fiber
            pl.BlockSpec((C_out, 1), lambda i: (0, 0)),            # theta fiber col
            pl.BlockSpec((C_out, 1), lambda i: (0, 0)),            # beta  fiber col
        ],
        out_specs=(pl.BlockSpec((TB, 1), lambda i: (i, 0)),
                   pl.BlockSpec((TB, C_out, n), lambda i: (i, 0, 0))),
        compiler_params=pltpu.CompilerParams(
            dimension_semantics=("parallel",),
            vmem_limit_bytes=_VMEM_LIMIT,
        ),
    )(scal, cartan, fiber, thetas_f, betas_f)
    return out_c, out_f


def hyperbolic_conv2d_forward(x, weight, conv_bias, betas, thetas,
                              in_channels, stride=1, padding=0, dilation=1,
                              bias=True):
    """Mirrors HyperbolicConv2d.forward (padding_mode='zeros', groups=1)."""
    stride, padding, dilation = _pair(stride), _pair(padding), _pair(dilation)
    B = x.shape[0]
    side = math.isqrt((x.shape[1] - 1) // in_channels)
    if side * side * in_channels + 1 != x.shape[1]:
        raise ValueError("Non-square inputs are not supported (yet)")

    cartan = x[:, :1]                                           # (B, 1)
    fiber_in = x[:, 1:].reshape(B, in_channels, side, side)     # NCHW

    fiber, Ho, Wo = conv2d_pallas(fiber_in, weight, conv_bias,
                                  stride, padding, dilation)    # (B, C_out, n)
    C_out = weight.shape[0]
    n = Ho * Wo
    sqrt_n = math.sqrt(n)

    # repeat_interleave(n) over channels == broadcast over the spatial axis of
    # the (C_out, n) fiber -> pass per-channel columns, no length-D buffers.
    theta0 = thetas[0].astype(jnp.float32)
    thetas_f = (thetas[1:] * sqrt_n).reshape(C_out, 1).astype(jnp.float32)
    if bias and betas is not None:
        beta0 = betas[0].astype(jnp.float32)
        betas_f = (betas[1:] * sqrt_n).reshape(C_out, 1).astype(jnp.float32)
    else:
        beta0 = jnp.zeros((), jnp.float32)                      # group identity
        betas_f = jnp.zeros((C_out, 1), jnp.float32)

    out_c, out_f = hyperbolic_step_pallas(cartan, fiber, theta0, thetas_f,
                                          beta0, betas_f)
    # (B, C_out, n) -> (B, C_out*n) is a free, contiguous NCHW flatten.
    return jnp.concatenate([out_c, out_f.reshape(B, -1)], axis=1)


# ----------------------------------------------------------------------------
# Demo
# ----------------------------------------------------------------------------

if __name__ == "__main__":
    B, C_in, C_out, side = 2, 4, 8, 16
    kh = kw = 3
    stride, padding, dilation = 1, 1, 1

    key = jax.random.PRNGKey(0)
    k1, k2, k3, k4, k5 = jax.random.split(key, 5)

    # module input: (B, C_in*side*side + 1) = (2, 1025)
    x = jax.random.normal(k1, (B, C_in * side * side + 1), dtype=jnp.float32)

    # fiberConv2d parameters (torch Conv2d shapes), deterministic init
    fan_in = C_in * kh * kw
    bound = 1.0 / math.sqrt(fan_in)
    weight = jax.random.uniform(k2, (C_out, C_in, kh, kw),
                                minval=-bound, maxval=bound, dtype=jnp.float32)
    conv_bias = jax.random.uniform(k3, (C_out,),
                                   minval=-bound, maxval=bound, dtype=jnp.float32)

    # betas: (C_out+1,) hyperbolic bias; thetas: (C_out+1,) point on the sphere
    betas = 0.01 * jax.random.normal(k4, (C_out + 1,), dtype=jnp.float32)
    thetas = jax.random.normal(k5, (C_out + 1,), dtype=jnp.float32)
    thetas = thetas / jnp.linalg.norm(thetas)

    out = hyperbolic_conv2d_forward(x, weight, conv_bias, betas, thetas,
                                    in_channels=C_in, stride=stride,
                                    padding=padding, dilation=dilation, bias=True)
    jax.block_until_ready(out)
    assert out.shape == (B, C_out * side * side + 1)
    print("KERNEL_OK")
</pallas_src>

<mosaic_0001>
module attributes {stable_mosaic.version = 11 : i64} {
  func.func @_conv_matmul_kernel(%arg0: i32, %arg1: i32, %arg2: memref<8x36xf32, #tpu.memory_space<vmem>>, %arg3: memref<1x36x256xf32, #tpu.memory_space<vmem>>, %arg4: memref<8x1xf32, #tpu.memory_space<vmem>>, %arg5: memref<1x8x256xf32, #tpu.memory_space<vmem>>) attributes {dimension_semantics = [#tpu.dimension_semantics<parallel>, #tpu.dimension_semantics<parallel>], iteration_bounds = array<i64: 2, 1>, scalar_prefetch = 0 : i64, scratch_operands = 0 : i64, tpu.core_type = #tpu.core_type<tc>, window_params = [{pipeline_mode = #tpu.pipeline_mode<synchronous>, transform_indices = @transform_0, window_bounds = array<i64: 8, 36>}, {transform_indices = @transform_1, window_bounds = array<i64: 1, 36, 256>}, {pipeline_mode = #tpu.pipeline_mode<synchronous>, transform_indices = @transform_2, window_bounds = array<i64: 8, 1>}, {transform_indices = @transform_3, window_bounds = array<i64: 1, 8, 256>}]} {
    %c0 = arith.constant 0 : index
    %c0_0 = arith.constant 0 : index
    %0 = vector.load %arg2[%c0, %c0_0] : memref<8x36xf32, #tpu.memory_space<vmem>>, vector<8x36xf32>
    %c0_1 = arith.constant 0 : index
    %c0_2 = arith.constant 0 : index
    %c0_3 = arith.constant 0 : index
    %1 = vector.load %arg3[%c0_1, %c0_2, %c0_3] : memref<1x36x256xf32, #tpu.memory_space<vmem>>, vector<1x36x256xf32>
    %2 = vector.shape_cast %1 : vector<1x36x256xf32> to vector<36x256xf32>
    %cst = arith.constant dense<0.000000e+00> : vector<8x256xf32>
    %3 = tpu.matmul %0, %2, %cst {dimension_numbers = #tpu.dot_dimension_numbers<[1], [0], [0], [1], [0, 0, 1, 1], [], []>} : vector<8x36xf32>, vector<36x256xf32>, vector<8x256xf32> -> vector<8x256xf32>
    %c0_4 = arith.constant 0 : index
    %c0_5 = arith.constant 0 : index
    %4 = vector.load %arg4[%c0_4, %c0_5] : memref<8x1xf32, #tpu.memory_space<vmem>>, vector<8x1xf32>
    %5 = vector.broadcast %4 : vector<8x1xf32> to vector<8x256xf32>
    %6 = arith.addf %3, %5 : vector<8x256xf32>
    %c0_6 = arith.constant 0 : index
    %c0_7 = arith.constant 0 : index
    %c0_8 = arith.constant 0 : index
    %7 = vector.load %arg5[%c0_6, %c0_7, %c0_8] : memref<1x8x256xf32, #tpu.memory_space<vmem>>, vector<1x8x256xf32>
    %8 = vector.shape_cast %7 : vector<1x8x256xf32> to vector<8x256xf32>
    %9 = vector.shape_cast %6 : vector<8x256xf32> to vector<1x8x256xf32>
    tpu.vector_store %arg5[%c0_6, %c0_7, %c0_8], %9 {strides = array<i32>} : memref<1x8x256xf32, #tpu.memory_space<vmem>>, vector<1x8x256xf32>,
    return
  }
  func.func @transform_0(%arg0: i32, %arg1: i32) -> (i32, i32) {
    %c0_i32 = arith.constant 0 : i32
    %c0_i32_0 = arith.constant 0 : i32
    %c0_i32_1 = arith.constant 0 : i32
    return %c0_i32, %c0_i32_0 : i32, i32
  }
  func.func @transform_1(%arg0: i32, %arg1: i32) -> (i32, i32, i32) {
    %c0_i32 = arith.constant 0 : i32
    %c0_i32_0 = arith.constant 0 : i32
    return %arg0, %c0_i32, %arg1 : i32, i32, i32
  }
  func.func @transform_2(%arg0: i32, %arg1: i32) -> (i32, i32) {
    %c0_i32 = arith.constant 0 : i32
    %c0_i32_0 = arith.constant 0 : i32
    %c0_i32_1 = arith.constant 0 : i32
    return %c0_i32, %c0_i32_0 : i32, i32
  }
  func.func @transform_3(%arg0: i32, %arg1: i32) -> (i32, i32, i32) {
    %c0_i32 = arith.constant 0 : i32
    %c0_i32_0 = arith.constant 0 : i32
    return %arg0, %c0_i32, %arg1 : i32, i32, i32
  }
}

</mosaic_0001>

<bundles_post_ra>
// kernel: tpu_custom_call.1
= control target key start
LH: loop header
LB: loop body
LE: loop exit
PB: predicated region body
PF: predicated region fallthrough
CT: control target
= control target key end

     0   :  { %8 = vsyncpa [#allocation3], 0  ;;  %s698_s0 = inlined_call_operand.vmem [shape: f32[8,36], index: 0, kind: input, shape index: {}]   ;;  %s699_s1 = inlined_call_operand.vmem [shape: f32[2,36,256], index: 1, kind: input, shape index: {}]   ;;  %s700_s2 = inlined_call_operand.vmem [shape: f32[8,1], index: 2, kind: input, shape index: {}]   ;;  %s701_s3 = inlined_call_operand.hbm [shape: f32[2,8,256], index: 3, kind: output, shape index: {}]  }
   0x1   :  { %10 = vsyncpa [#allocation3 + $0x1], 0  ;;  %s580_s12 = smov 0   ;;  %s582_s13 = smov 0  }
   0x2   :  { %s584_s14 = smov 0   ;;  %s586_s15 = smov 0  }
   0x3   :  { %s588_s16 = smov 0   ;;  %s590_s17 = smov 0  }
   0x4 LB: > { %s394_s18 = sadd.s32 4294967295, %s555_s17   ;;  %s395_s19 = sadd.s32 4294967294, %s555_s17   ;;  %s555_s17 = sphi %s590_s17, %s16_s17   ;;  %s551_s16 = sphi %s588_s16, %s708_s16   ;;  %s547_s15 = sphi %s586_s15, %s707_s15   ;;  %s543_s14 = sphi %s584_s14, %s706_s14   ;;  %s539_s13 = sphi %s582_s13, %s705_s13   ;;  %s535_s12 = sphi %s580_s12, %s704_s12  }
   0x5   : > { %s28_s20 = sadd.s32 1, %s551_s16  ;;  %s107_s21 = sadd.s32 1, %s543_s14 }
   0x6   : > { %p30_p0 = scmp.ge.s32.totalorder %s28_s20, 2  ;;  %p117_p1 = scmp.ne.s32.totalorder %s543_s14, %s539_s13 }
   0x7   : > { %p118_p2 = scmp.eq.s32.totalorder %s394_s18, 1  ;;  %p123_p3 = scmp.ne.s32.totalorder %s539_s13, %s535_s12 }
   0x8   : > { %s710_s20 = smov (%p30_p0, %s28_s20), 0  ;;  %p124_p5 = scmp.eq.s32.totalorder %s395_s19, 1 }
   0x9   : > { %p620_p4 = por %p118_p2, %p117_p1  ;;  %s102_s23 = ssub.s32 %s551_s16, %s710_s20 }
   0xa   : > { %p398_p6 = scmp.ge.s32.totalorder %s555_s17, 1  ;;  %p105_p7 = scmp.eq.s32.totalorder %s102_s23, 0 }
   0xb   : > { %p627_p8 = por %p124_p5, %p123_p3  ;;  %p161_p9 = scmp.lt.s32.totalorder %s555_s17, 3 }
   0xc   : > { %s633_s25 = scalar_select %p105_p7, %s543_s14, %s107_s21  }
   0xd   : > { %p162_p10 = pnand %p398_p6, %p161_p9 }
   0xe   : > { %p190_p11 = scmp.lt.s32.totalorder (!%p162_p10), %s547_s15, 1  ;;  %v557_v0 = vmov (!%p162_p10), 0.0   ;;  %v558_v1 = vmov (!%p162_p10), 0   ;;  %v211_v2 = vld [vmem:[%s700_s2] sm:$0xff] (!%p162_p10)  ;;  %vm221_vm0 = vcmask (!%p162_p10), 1043456   ;;  %vm217_vm1 = vcmask (!%p162_p10), 293888  }
   0xf   : > { %165 = sbr.rel (%p162_p10) target bundleno = 269 (0x10d), region = 32  ;;  %292 = vmatprep.mubr.f32.mxu0 (!%p162_p10), %v557_v0  ;;  %476 = vset.pattern.permute.xlu0 (!%p162_p10), %v558_v1  ;;  %v200_v17 = vld [vmem:[%s698_s0] sm:$0xff] (!%p162_p10)  ;;  %s186_s8 = sand.u32 (!%p162_p10), 1, %s539_s13  }
  0x10   : > { %214 = vperm.xlu0 (!%p162_p10), %476, %v211_v2   ;;  %s399_s9 = sshll.u32 (!%p162_p10), %s186_s8, 4  ;;  %s409_s10 = sshll.u32 (!%p162_p10), %s547_s15, 8 }
  0x11   : > { %s188_s11 = scalar_lea.vmem (!%p162_p10), [#allocation2], %s399_s9  ;;  %s651_s23 = scalar_lea.hbm (!%p162_p10), %s701_s3, %s409_s10 }
  0x12   : > { %s318_s18 = sshll.u32 (!%p162_p10), %s188_s11, 4  ;;  %s302_s26 = scalar_lea.sflag (!%p162_p10), [#allocation3], %s186_s8  ;;  %s653_s18 = int_to_ptr.vmem [resolvable:$true] %s318_s18 }
  0x13   : > { %s559_s27 = smov (!%p162_p10), [#allocation2]  }
  0x16   : > { %s191_s28 = scalar_select %p190_p11, %s547_s15, 1 }
  0x17   : > { %s477_s15 = scalar_lea.vmem %s653_s18, 256 }
  0x18   : > { %s418_s29 = smul.u32 80, %s191_s28  ;;  %p478_p12 = scmp.ne.s32.totalorder %s653_s18, %s477_s15 }
  0x19   : > { %s481_s28 = sshll.u32 %s559_s27, 4  ;;  %s482_s28 = int_to_ptr.vmem [resolvable:$false] %s481_s28 }
  0x1a   : > { %s197_s5 = scalar_lea.vmem %s699_s1, %s418_s29  ;;  %p479_p13 = pnand %p478_p12, %p620_p4 }
  0x1b   : > { %v202_v3 = vld [vmem:[%s197_s5 + $0x8] sm:$0xff]  ;;  %v204_v4 = vld [vmem:[%s197_s5 + $0x18] sm:$0xff]  ;;  %v201_v5 = vld [vmem:[%s197_s5] sm:$0xff]  ;;  %s483_s29 = scalar_lea.vmem %s482_s28, 512  ;;  %p484_p1 = scmp.lt.s32.totalorder %s653_s18, %s482_s28 }
  0x1c   : > { %v410_v6 = vpack.c.bf16 %v204_v4, %v202_v3  ;;  %v203_v7 = vld [vmem:[%s197_s5 + $0x10] sm:$0xff]  ;;  %v206_v8 = vld [vmem:[%s197_s5 + $0x28] sm:$0xff]  ;;  %v208_v9 = vld [vmem:[%s197_s5 + $0x38] sm:$0xff]  ;;  %p480_p0 = pneg %p479_p13  ;;  %p485_p2 = scmp.lt.s32.totalorder %s483_s29, %s477_s15 }
  0x1d   : > { %v412_v10 = vpack.c.bf16 %v203_v7, %v201_v5  ;;  %v414_v11 = vpack.c.bf16 %v208_v9, %v206_v8  ;;  %v205_v12 = vld [vmem:[%s197_s5 + $0x20] sm:$0xff]  ;;  %v207_v13 = vld [vmem:[%s197_s5 + $0x30] sm:$0xff]  ;;  %v210_v15 = vld [vmem:[%s197_s5 + $0x48] sm:$0xf] }
  0x1e   : > { %411 = vmatprep.subr.bf16.mxu0 %v410_v6  ;;  %v416_v14 = vpack.c.bf16 %v207_v13, %v205_v12  ;;  %v209_v16 = vld [vmem:[%s197_s5 + $0x40] sm:$0xf]  ;;  %p486_p3 = por %p485_p2, %p484_p1 }
  0x1f   : > { %413 = vmatpush1.bf16.msra.mxu0 %v412_v10 }
  0x20   : > { %415 = vmatprep.subr.bf16.mxu0 %v414_v11  ;;  %p487_p5 = pnand %p486_p3, %p480_p0 }
  0x23   : > { %417 = vmatpush1.bf16.msra.mxu0 %v416_v14 }
  0x24   : > { %401 = vmatprep.subr.msk.mxu0 %vm221_vm0, %v210_v15 }
  0x27   : > { %402 = vmatpush1.msk.msra.mxu0 %vm221_vm0, %v209_v16 }
  0x28   : > { %403 = vmatmul.mubr.msk.f32.vlgmr.msra.gmra.mrb[0].mxu0 %vm217_vm1, %v200_v17 }
  0x8f   : > { %v215_v18 = vpop.permute.xlu0 %214 }
  0xfb   : > { %v294_v19 = vpop.f32.mrb[0].mxu0 }
  0xfc   : > { %v295_v20 = vadd.f32 %v294_v19, %v215_v18  ;;  %v296_v21 = vpop.f32.mrb[1].mxu0 }
  0xfd   : > { %v297_v22 = vadd.f32 %v296_v21, %v215_v18 }
  0xfe   : > { %299 = vst [vmem:[%s188_s11] sm:$0xff] %v295_v20 }
  0xff   : > { %300 = vst [vmem:[%s188_s11 + $0x8] sm:$0xff] %v297_v22 }
 0x100   : > { %490 = shalt.err (!%p487_p5)
}
 0x101   : > { %s491_s30 = scalar_lea.hbm %s651_s23, 256  ;;  %s495_s6 = scalar_lea.hbm %s701_s3, 512 }
 0x102   : > { %p492_p6 = scmp.ne.s32.totalorder %s651_s23, %s491_s30  ;;  %p496_p10 = scmp.lt.u32.totalorder %s651_s23, %s701_s3 }
 0x103   : > { %p497_p11 = scmp.lt.u32.totalorder %s495_s6, %s491_s30  ;;  %p499_p13 = scmp.lt.u32.totalorder %s491_s30, %s651_s23 }
 0x104   : > { %p493_p7 = pnand %p492_p6, %p620_p4 }
 0x105   : > { %p498_p12 = por %p497_p11, %p496_p10 }
 0x106   : > { %p494_p9 = pneg %p493_p7 }
 0x107   : > { %p500_p0 = por %p499_p13, %p498_p12 }
 0x109   : > { %p501_p1 = pnand %p500_p0, %p494_p9 }
 0x10b   : > { %504 = shalt.err (!%p501_p1)
}
 0x10c   : > { %419 = dma.vmem_to_hbm [thread:$0]  (%p620_p4), %s653_s18, 256, %s651_s23, %s302_s26  }
 0x10d PF: > { %p425_p2 = scmp.ge.s32.totalorder %s555_s17, 2  ;;  %s330_s9 = sand.u32 1, %s535_s12  }
 0x10e   : > { %s331_s10 = scalar_lea.sflag [#allocation3], %s330_s9 }
 0x10f   : > { %p422_p3 = pnand %p425_p2, %p627_p8 }
 0x111   : > { %530 = dma.done.wait (!%p422_p3), %s331_s10, 256  }
 0x112   : > { %532 = vsyncadd (!%p422_p3), %s331_s10, 4294967040  ;;  %s16_s17 = sadd.s32 1, %s555_s17   ;;  %s704_s12 = smov %s539_s13 }
 0x113   : > { %p13_p5 = scmp.ge.s32.totalorder %s16_s17, 4   ;;  %s705_s13 = smov %s543_s14 }
 0x114   : > { %s706_s14 = smov %s633_s25  ;;  %s707_s15 = smov %s551_s16 }
 0x115   : > { %s708_s16 = smov %s710_s20  ;;  %15 = sbr.rel (!%p13_p5) target bundleno = 4 (0x4), region = 67 }
 0x11c   :  { %336 = vsyncpa [#allocation3], 1 }
 0x11d   :  { %338 = vsyncpa [#allocation3 + $0x1], 1 }

</bundles_post_ra>
